<compile_context>
chip_gen: v7x
topology: tpu7x:2x2x1
jax: 0.10.0
libtpu: 0.0.40
codegen_flags: <defaults>
</compile_context>

<pallas_src>
import functools

import numpy as np
import jax
import jax.numpy as jnp
from jax.experimental import pallas as pl
from jax.experimental.pallas import tpu as pltpu


# --------------------------------------------------------------------------
# Per-tap plan: shift offsets + boundary masks on the (Ho, Wo) output grid.
# For stride 1 a tap (dy,dx) is a flat-pixel shift of (dy-1)*Wo + (dx-1).
# For stride 2 (polyphase input) a tap reads phase ((dy+1)%2, (dx+1)%2)
# shifted by (qy*Wo + qx) with qy,qx in {-1,0}.
# --------------------------------------------------------------------------
def _plan_taps(stride, Ho, Wo):
    Np = Ho * Wo
    yo = np.arange(Ho)[:, None]
    xo = np.arange(Wo)[None, :]
    plan = []
    masks = np.zeros((9, Np), np.float32)
    k = 0
    for dy in range(3):
        for dx in range(3):
            if stride == 1:
                ry, rx, ph = dy - 1, dx - 1, 0
            else:
                ry = -1 if dy == 0 else 0
                rx = -1 if dx == 0 else 0
                ph = ((dy + 1) % 2) * 2 + ((dx + 1) % 2)
            off = ry * Wo + rx
            lo, hi = max(0, -off), Np - max(0, off)
            valid = ((yo + ry >= 0) & (yo + ry < Ho) &
                     (xo + rx >= 0) & (xo + rx < Wo))
            masks[k] = valid.astype(np.float32).reshape(-1)
            plan.append((ph, off, lo, hi))
            k += 1
    return plan, masks


# --------------------------------------------------------------------------
# Fused BasicBlock kernel (per grid step: Bb images).
# --------------------------------------------------------------------------
def _make_kernel(Cin, C1, Cout, Np, Bb, stride, downsample,
                 plan1, mask1_np, plan2, mask2_np):
    f32 = jnp.float32

    def kernel(x_ref, m1_ref, m2_ref, w1_ref, b1_ref, w2_ref, b2_ref,
               o_ref, col1, col2, mid):
        # ---- conv1 im2col: shifted lane slices of x (+ boundary masks) -----
        # Every column of every tap block is rewritten each step (data or
        # zeros), so no cross-step scratch state is needed (megacore safe).
        for b in range(Bb):
            base = b * Np
            for k, (ph, off, lo, hi) in enumerate(plan1):
                if stride == 1:
                    src = x_ref[b, :, lo + off:hi + off]
                else:
                    src = x_ref[b, ph, :, lo + off:hi + off]
                if not np.all(mask1_np[k, lo:hi] == 1.0):
                    src = src * m1_ref[k:k + 1, lo:hi]
                r0 = k * Cin
                if lo > 0:
                    col1[r0:r0 + Cin, base:base + lo] = jnp.zeros((Cin, lo), f32)
                col1[r0:r0 + Cin, base + lo:base + hi] = src
                if hi < Np:
                    col1[r0:r0 + Cin, base + hi:base + Np] = (
                        jnp.zeros((Cin, Np - hi), f32))

        # ---- conv1 GEMM (BN1 scale folded into weights) + bias + ReLU ------
        h = jnp.dot(w1_ref[...], col1[...], preferred_element_type=f32)
        mid[...] = jnp.maximum(h + b1_ref[...], 0.0)

        # ---- conv2 im2col from the VMEM-resident intermediate --------------
        for b in range(Bb):
            base = b * Np
            for k, (_, off, lo, hi) in enumerate(plan2):
                src = mid[:, base + lo + off:base + hi + off]
                if not np.all(mask2_np[k, lo:hi] == 1.0):
                    src = src * m2_ref[k:k + 1, lo:hi]
                r0 = k * C1
                if lo > 0:
                    col2[r0:r0 + C1, base:base + lo] = jnp.zeros((C1, lo), f32)
                col2[r0:r0 + C1, base + lo:base + hi] = src
                if hi < Np:
                    col2[r0:r0 + C1, base + hi:base + Np] = (
                        jnp.zeros((C1, Np - hi), f32))
            if downsample:
                # 1x1 shortcut folded into the conv2 GEMM: extra K rows hold
                # the (stride-subsampled) input in channel-major form.
                xs = x_ref[b, 0] if stride > 1 else x_ref[b]
                col2[9 * C1:9 * C1 + Cin, base:base + Np] = xs

        # ---- conv2(+shortcut) GEMM, bias, residual, ReLU, store (per image,
        #      to bound live vregs; store is lane-dense NCHW-flat) -----------
        for b in range(Bb):
            base = b * Np
            o = jnp.dot(w2_ref[...], col2[:, base:base + Np],
                        preferred_element_type=f32)
            o = o + b2_ref[...]
            if not downsample:
                o = o + x_ref[b]                       # identity residual
            o_ref[b] = jnp.maximum(o, 0.0)

    return kernel


# --------------------------------------------------------------------------
# Wrapper: BN folding, (free) layout prep, one pallas_call.
# --------------------------------------------------------------------------
def basic_block_forward(x_nchw, params, *, stride, in_planes, planes,
                        eps=1e-5, max_images_per_step=8):
    """out = relu(bn2(conv2(relu(bn1(conv1(x))))) + shortcut(x)); NCHW in/out."""
    B, Cin, H, W = x_nchw.shape
    assert Cin == in_planes
    assert stride in (1, 2)
    C1 = Cout = planes
    downsample = (stride != 1) or (in_planes != planes)
    f32 = jnp.float32

    if stride == 1:
        Ho, Wo = H, W
    else:
        assert H % 2 == 0 and W % 2 == 0
        Ho, Wo = H // 2, W // 2
    Np = Ho * Wo

    # images per grid step: largest divisor of B <= cap, keeping >= 2 grid
    # steps so both v7x TensorCores get work under "parallel" semantics.
    bb_cap = min(max_images_per_step, max(1, B // 2))
    Bb = max(d for d in range(1, bb_cap + 1) if B % d == 0)

    # ---- fold eval-mode BN into conv weights / per-channel biases ----------
    def fold(g, b, m, v):
        s = g.astype(f32) / jnp.sqrt(v.astype(f32) + eps)
        return s, b.astype(f32) - m.astype(f32) * s

    s1, c1 = fold(params["g1"], params["b1"], params["m1"], params["v1"])
    s2, c2 = fold(params["g2"], params["b2"], params["m2"], params["v2"])
    w1f = (jnp.transpose(params["w1"].astype(f32), (0, 2, 3, 1))
           .reshape(C1, 9 * Cin)) * s1[:, None]
    w2f = (jnp.transpose(params["w2"].astype(f32), (0, 2, 3, 1))
           .reshape(Cout, 9 * C1)) * s2[:, None]
    bias2 = c2
    if downsample:
        ss, cs = fold(params["gs"], params["bs"], params["ms"], params["vs"])
        wsf = params["ws"].astype(f32)[:, :, 0, 0] * ss[:, None]
        w2f = jnp.concatenate([w2f, wsf], axis=1)       # (Cout, 9*C1 + Cin)
        bias2 = bias2 + cs
    K2 = 9 * C1 + (Cin if downsample else 0)

    # ---- input: NCHW fed directly.  stride 1 -> free reshape; stride 2 ->
    #      one-off polyphase split (conv1 computed only at its true output
    #      positions; shortcut's x[:, :, ::2, ::2] = phase 0 for free). ------
    if stride == 1:
        x_in = x_nchw.astype(f32).reshape(B, Cin, Np)
        x_spec = pl.BlockSpec((Bb, Cin, Np), lambda i: (i, 0, 0))
    else:
        x_in = (x_nchw.astype(f32)
                .reshape(B, Cin, Ho, 2, Wo, 2)
                .transpose(0, 3, 5, 1, 2, 4)
                .reshape(B, 4, Cin, Np))
        x_spec = pl.BlockSpec((Bb, 4, Cin, Np), lambda i: (i, 0, 0, 0))

    plan1, mask1 = _plan_taps(stride, Ho, Wo)
    plan2, mask2 = _plan_taps(1, Ho, Wo)

    kern = _make_kernel(Cin, C1, Cout, Np, Bb, stride, downsample,
                        plan1, mask1, plan2, mask2)

    flops = 2 * B * Np * (9 * Cin * C1 + K2 * Cout)
    bytes_accessed = 4 * (x_in.size + mask1.size + mask2.size + w1f.size
                          + w2f.size + C1 + Cout + B * Cout * Np)

    out = pl.pallas_call(
        kern,
        grid=(B // Bb,),
        in_specs=[
            x_spec,
            pl.BlockSpec((9, Np), lambda i: (0, 0)),          # conv1 tap masks
            pl.BlockSpec((9, Np), lambda i: (0, 0)),          # conv2 tap masks
            pl.BlockSpec((C1, 9 * Cin), lambda i: (0, 0)),    # conv1 weights
            pl.BlockSpec((C1, 1), lambda i: (0, 0)),          # BN1 bias
            pl.BlockSpec((Cout, K2), lambda i: (0, 0)),       # conv2(+sc) weights
            pl.BlockSpec((Cout, 1), lambda i: (0, 0)),        # BN2(+sc) bias
        ],
        out_specs=pl.BlockSpec((Bb, Cout, Np), lambda i: (i, 0, 0)),
        out_shape=jax.ShapeDtypeStruct((B, Cout, Np), f32),
        scratch_shapes=[
            pltpu.VMEM((9 * Cin, Bb * Np), f32),   # conv1 im2col
            pltpu.VMEM((K2, Bb * Np), f32),        # conv2 (+shortcut) im2col
            pltpu.VMEM((C1, Bb * Np), f32),        # conv1+BN1+ReLU intermediate
        ],
        compiler_params=pltpu.CompilerParams(
            dimension_semantics=("parallel",)),
        cost_estimate=pl.CostEstimate(flops=flops, transcendentals=0,
                                      bytes_accessed=bytes_accessed),
    )(x_in, jnp.asarray(mask1), jnp.asarray(mask2),
      w1f, c1.reshape(C1, 1), w2f, bias2.reshape(Cout, 1))

    return out.reshape(B, Cout, Ho, Wo)              # NCHW already: free reshape


# --------------------------------------------------------------------------
# Pure-JAX reference (mirrors the PyTorch module, eval-mode BN).
# --------------------------------------------------------------------------
def reference_block(x, p, *, stride, in_planes, planes):
    def conv(x, w, s, pad):
        return jax.lax.conv_general_dilated(
            x, w, (s, s), ((pad, pad), (pad, pad)),
            dimension_numbers=("NCHW", "OIHW", "NCHW"))

    def bn(x, g, b, m, v):
        sh = (1, -1, 1, 1)
        return ((x - m.reshape(sh)) / jnp.sqrt(v.reshape(sh) + 1e-5)
                * g.reshape(sh) + b.reshape(sh))

    out = jax.nn.relu(bn(conv(x, p["w1"], stride, 1),
                         p["g1"], p["b1"], p["m1"], p["v1"]))
    out = bn(conv(out, p["w2"], 1, 1), p["g2"], p["b2"], p["m2"], p["v2"])
    if stride != 1 or in_planes != planes:
        sc = bn(conv(x, p["ws"], stride, 0), p["gs"], p["bs"], p["ms"], p["vs"])
    else:
        sc = x
    return jax.nn.relu(out + sc)


# --------------------------------------------------------------------------
if __name__ == "__main__":
    def bn_params(key, c):
        k = jax.random.split(key, 4)
        return (jax.random.normal(k[0], (c,), jnp.float32) * 0.1 + 1.0,   # gamma
                jax.random.normal(k[1], (c,), jnp.float32) * 0.1,         # beta
                jax.random.normal(k[2], (c,), jnp.float32) * 0.1,         # mean
                jnp.abs(jax.random.normal(k[3], (c,), jnp.float32)) + 0.5)  # var

    def make_params(key, in_planes, planes, downsample):
        ks = jax.random.split(key, 6)
        g1, b1, m1, v1 = bn_params(ks[3], planes)
        g2, b2, m2, v2 = bn_params(ks[4], planes)
        p = {
            "w1": jax.random.normal(ks[0], (planes, in_planes, 3, 3), jnp.float32) * 0.1,
            "w2": jax.random.normal(ks[1], (planes, planes, 3, 3), jnp.float32) * 0.1,
            "g1": g1, "b1": b1, "m1": m1, "v1": v1,
            "g2": g2, "b2": b2, "m2": m2, "v2": v2,
        }
        if downsample:
            gs, bs, ms, vs = bn_params(ks[5], planes)
            p["ws"] = jax.random.normal(ks[2], (planes, in_planes, 1, 1),
                                        jnp.float32) * 0.1
            p.update({"gs": gs, "bs": bs, "ms": ms, "vs": vs})
        return p

    key = jax.random.PRNGKey(0)
    cases = [
        # (B, in_planes, planes, H, W, stride)
        (2, 4, 8, 16, 16, 2),    # stride-2 downsample (polyphase + 1x1 shortcut)
        (2, 8, 8, 16, 16, 1),    # identity-shortcut block
        (2, 4, 8, 16, 16, 1),    # stride-1 block with 1x1 shortcut
        (4, 8, 8, 16, 16, 2),    # stride-2, two images folded per grid step
    ]
    for i, (B, cin, cpl, H, W, stride) in enumerate(cases):
        kp, kx, key = jax.random.split(key, 3)
        downsample = (stride != 1) or (cin != cpl)
        params = make_params(kp, cin, cpl, downsample)
        x = jax.random.normal(kx, (B, cin, H, W), jnp.float32)

        fwd = jax.jit(functools.partial(
            basic_block_forward, stride=stride, in_planes=cin, planes=cpl))
        out = jax.block_until_ready(fwd(x, params))

        ref = reference_block(x, params, stride=stride, in_planes=cin, planes=cpl)
        assert out.shape == ref.shape, (out.shape, ref.shape)
        err = float(jnp.max(jnp.abs(out - ref)))
        assert err < 1e-4, f"case {i}: max abs error {err}"

    print("KERNEL_OK")
</pallas_src>

<mosaic_0001>
module attributes {stable_mosaic.version = 11 : i64} {
  func.func @kernel(%arg0: i32, %arg1: memref<1x4x4x64xf32, #tpu.memory_space<vmem>>, %arg2: memref<9x64xf32, #tpu.memory_space<vmem>>, %arg3: memref<9x64xf32, #tpu.memory_space<vmem>>, %arg4: memref<8x36xf32, #tpu.memory_space<vmem>>, %arg5: memref<8x1xf32, #tpu.memory_space<vmem>>, %arg6: memref<8x76xf32, #tpu.memory_space<vmem>>, %arg7: memref<8x1xf32, #tpu.memory_space<vmem>>, %arg8: memref<1x8x64xf32, #tpu.memory_space<vmem>>, %arg9: memref<36x64xf32, #tpu.memory_space<vmem>>, %arg10: memref<76x64xf32, #tpu.memory_space<vmem>>, %arg11: memref<8x64xf32, #tpu.memory_space<vmem>>) attributes {dimension_semantics = [#tpu.dimension_semantics<parallel>], iteration_bounds = array<i64: 2>, scalar_prefetch = 0 : i64, scratch_operands = 3 : i64, tpu.core_type = #tpu.core_type<tc>, window_params = [{transform_indices = @transform_0, window_bounds = array<i64: 1, 4, 4, 64>}, {pipeline_mode = #tpu.pipeline_mode<synchronous>, transform_indices = @transform_1, window_bounds = array<i64: 9, 64>}, {pipeline_mode = #tpu.pipeline_mode<synchronous>, transform_indices = @transform_2, window_bounds = array<i64: 9, 64>}, {pipeline_mode = #tpu.pipeline_mode<synchronous>, transform_indices = @transform_3, window_bounds = array<i64: 8, 36>}, {pipeline_mode = #tpu.pipeline_mode<synchronous>, transform_indices = @transform_4, window_bounds = array<i64: 8, 1>}, {pipeline_mode = #tpu.pipeline_mode<synchronous>, transform_indices = @transform_5, window_bounds = array<i64: 8, 76>}, {pipeline_mode = #tpu.pipeline_mode<synchronous>, transform_indices = @transform_6, window_bounds = array<i64: 8, 1>}, {transform_indices = @transform_7, window_bounds = array<i64: 1, 8, 64>}]} {
    %c0 = arith.constant 0 : index
    %c3 = arith.constant 3 : index
    %c0_0 = arith.constant 0 : index
    %c0_1 = arith.constant 0 : index
    %0 = vector.load %arg1[%c0, %c3, %c0_0, %c0_1] : memref<1x4x4x64xf32, #tpu.memory_space<vmem>>, vector<1x1x4x55xf32>
    %1 = vector.shape_cast %0 : vector<1x1x4x55xf32> to vector<4x55xf32>
    %c0_2 = arith.constant 0 : index
    %c9 = arith.constant 9 : index
    %2 = vector.load %arg2[%c0_2, %c9] : memref<9x64xf32, #tpu.memory_space<vmem>>, vector<1x55xf32>
    %3 = vector.broadcast %2 : vector<1x55xf32> to vector<4x55xf32>
    %4 = arith.mulf %1, %3 : vector<4x55xf32>
    %cst = arith.constant 0.000000e+00 : f32
    %5 = vector.broadcast %cst : f32 to vector<4x9xf32>
    %c0_3 = arith.constant 0 : index
    %c0_4 = arith.constant 0 : index
    %6 = vector.load %arg9[%c0_3, %c0_4] : memref<36x64xf32, #tpu.memory_space<vmem>>, vector<4x9xf32>
    tpu.vector_store %arg9[%c0_3, %c0_4], %5 {strides = array<i32>} : memref<36x64xf32, #tpu.memory_space<vmem>>, vector<4x9xf32>,
    %c0_5 = arith.constant 0 : index
    %c9_6 = arith.constant 9 : index
    %7 = vector.load %arg9[%c0_5, %c9_6] : memref<36x64xf32, #tpu.memory_space<vmem>>, vector<4x55xf32>
    tpu.vector_store %arg9[%c0_5, %c9_6], %4 {strides = array<i32>} : memref<36x64xf32, #tpu.memory_space<vmem>>, vector<4x55xf32>,
    %c0_7 = arith.constant 0 : index
    %c2 = arith.constant 2 : index
    %c0_8 = arith.constant 0 : index
    %c0_9 = arith.constant 0 : index
    %8 = vector.load %arg1[%c0_7, %c2, %c0_8, %c0_9] : memref<1x4x4x64xf32, #tpu.memory_space<vmem>>, vector<1x1x4x56xf32>
    %9 = vector.shape_cast %8 : vector<1x1x4x56xf32> to vector<4x56xf32>
    %cst_10 = arith.constant 0.000000e+00 : f32
    %10 = vector.broadcast %cst_10 : f32 to vector<4x8xf32>
    %c4 = arith.constant 4 : index
    %c0_11 = arith.constant 0 : index
    %11 = vector.load %arg9[%c4, %c0_11] : memref<36x64xf32, #tpu.memory_space<vmem>>, vector<4x8xf32>
    tpu.vector_store %arg9[%c4, %c0_11], %10 {strides = array<i32>} : memref<36x64xf32, #tpu.memory_space<vmem>>, vector<4x8xf32>,
    %c4_12 = arith.constant 4 : index
    %c8 = arith.constant 8 : index
    %12 = vector.load %arg9[%c4_12, %c8] : memref<36x64xf32, #tpu.memory_space<vmem>>, vector<4x56xf32>
    tpu.vector_store %arg9[%c4_12, %c8], %9 {strides = array<i32>} : memref<36x64xf32, #tpu.memory_space<vmem>>, vector<4x56xf32>,
    %c0_13 = arith.constant 0 : index
    %c3_14 = arith.constant 3 : index
    %c0_15 = arith.constant 0 : index
    %c0_16 = arith.constant 0 : index
    %13 = vector.load %arg1[%c0_13, %c3_14, %c0_15, %c0_16] : memref<1x4x4x64xf32, #tpu.memory_space<vmem>>, vector<1x1x4x56xf32>
    %14 = vector.shape_cast %13 : vector<1x1x4x56xf32> to vector<4x56xf32>
    %cst_17 = arith.constant 0.000000e+00 : f32
    %15 = vector.broadcast %cst_17 : f32 to vector<4x8xf32>
    %c8_18 = arith.constant 8 : index
    %c0_19 = arith.constant 0 : index
    %16 = vector.load %arg9[%c8_18, %c0_19] : memref<36x64xf32, #tpu.memory_space<vmem>>, vector<4x8xf32>
    tpu.vector_store %arg9[%c8_18, %c0_19], %15 {strides = array<i32>} : memref<36x64xf32, #tpu.memory_space<vmem>>, vector<4x8xf32>,
    %c8_20 = arith.constant 8 : index
    %c8_21 = arith.constant 8 : index
    %17 = vector.load %arg9[%c8_20, %c8_21] : memref<36x64xf32, #tpu.memory_space<vmem>>, vector<4x56xf32>
    tpu.vector_store %arg9[%c8_20, %c8_21], %14 {strides = array<i32>} : memref<36x64xf32, #tpu.memory_space<vmem>>, vector<4x56xf32>,
    %c0_22 = arith.constant 0 : index
    %c1 = arith.constant 1 : index
    %c0_23 = arith.constant 0 : index
    %c0_24 = arith.constant 0 : index
    %18 = vector.load %arg1[%c0_22, %c1, %c0_23, %c0_24] : memref<1x4x4x64xf32, #tpu.memory_space<vmem>>, vector<1x1x4x63xf32>
    %19 = vector.shape_cast %18 : vector<1x1x4x63xf32> to vector<4x63xf32>
    %c3_25 = arith.constant 3 : index
    %c1_26 = arith.constant 1 : index
    %20 = vector.load %arg2[%c3_25, %c1_26] : memref<9x64xf32, #tpu.memory_space<vmem>>, vector<1x63xf32>
    %21 = vector.broadcast %20 : vector<1x63xf32> to vector<4x63xf32>
    %22 = arith.mulf %19, %21 : vector<4x63xf32>
    %cst_27 = arith.constant 0.000000e+00 : f32
    %23 = vector.broadcast %cst_27 : f32 to vector<4x1xf32>
    %c12 = arith.constant 12 : index
    %c0_28 = arith.constant 0 : index
    %24 = vector.load %arg9[%c12, %c0_28] : memref<36x64xf32, #tpu.memory_space<vmem>>, vector<4x1xf32>
    tpu.vector_store %arg9[%c12, %c0_28], %23 {strides = array<i32>} : memref<36x64xf32, #tpu.memory_space<vmem>>, vector<4x1xf32>,
    %c12_29 = arith.constant 12 : index
    %c1_30 = arith.constant 1 : index
    %25 = vector.load %arg9[%c12_29, %c1_30] : memref<36x64xf32, #tpu.memory_space<vmem>>, vector<4x63xf32>
    tpu.vector_store %arg9[%c12_29, %c1_30], %22 {strides = array<i32>} : memref<36x64xf32, #tpu.memory_space<vmem>>, vector<4x63xf32>,
    %c0_31 = arith.constant 0 : index
    %c0_32 = arith.constant 0 : index
    %c0_33 = arith.constant 0 : index
    %c0_34 = arith.constant 0 : index
    %26 = vector.load %arg1[%c0_31, %c0_32, %c0_33, %c0_34] : memref<1x4x4x64xf32, #tpu.memory_space<vmem>>, vector<1x1x4x64xf32>
    %27 = vector.shape_cast %26 : vector<1x1x4x64xf32> to vector<4x64xf32>
    %c16 = arith.constant 16 : index
    %c0_35 = arith.constant 0 : index
    %28 = vector.load %arg9[%c16, %c0_35] : memref<36x64xf32, #tpu.memory_space<vmem>>, vector<4x64xf32>
    tpu.vector_store %arg9[%c16, %c0_35], %27 {strides = array<i32>} : memref<36x64xf32, #tpu.memory_space<vmem>>, vector<4x64xf32>,
    %c0_36 = arith.constant 0 : index
    %c1_37 = arith.constant 1 : index
    %c0_38 = arith.constant 0 : index
    %c0_39 = arith.constant 0 : index
    %29 = vector.load %arg1[%c0_36, %c1_37, %c0_38, %c0_39] : memref<1x4x4x64xf32, #tpu.memory_space<vmem>>, vector<1x1x4x64xf32>
    %30 = vector.shape_cast %29 : vector<1x1x4x64xf32> to vector<4x64xf32>
    %c20 = arith.constant 20 : index
    %c0_40 = arith.constant 0 : index
    %31 = vector.load %arg9[%c20, %c0_40] : memref<36x64xf32, #tpu.memory_space<vmem>>, vector<4x64xf32>
    tpu.vector_store %arg9[%c20, %c0_40], %30 {strides = array<i32>} : memref<36x64xf32, #tpu.memory_space<vmem>>, vector<4x64xf32>,
    %c0_41 = arith.constant 0 : index
    %c3_42 = arith.constant 3 : index
    %c0_43 = arith.constant 0 : index
    %c0_44 = arith.constant 0 : index
    %32 = vector.load %arg1[%c0_41, %c3_42, %c0_43, %c0_44] : memref<1x4x4x64xf32, #tpu.memory_space<vmem>>, vector<1x1x4x63xf32>
    %33 = vector.shape_cast %32 : vector<1x1x4x63xf32> to vector<4x63xf32>
    %c6 = arith.constant 6 : index
    %c1_45 = arith.constant 1 : index
    %34 = vector.load %arg2[%c6, %c1_45] : memref<9x64xf32, #tpu.memory_space<vmem>>, vector<1x63xf32>
    %35 = vector.broadcast %34 : vector<1x63xf32> to vector<4x63xf32>
    %36 = arith.mulf %33, %35 : vector<4x63xf32>
    %cst_46 = arith.constant 0.000000e+00 : f32
    %37 = vector.broadcast %cst_46 : f32 to vector<4x1xf32>
    %c24 = arith.constant 24 : index
    %c0_47 = arith.constant 0 : index
    %38 = vector.load %arg9[%c24, %c0_47] : memref<36x64xf32, #tpu.memory_space<vmem>>, vector<4x1xf32>
    tpu.vector_store %arg9[%c24, %c0_47], %37 {strides = array<i32>} : memref<36x64xf32, #tpu.memory_space<vmem>>, vector<4x1xf32>,
    %c24_48 = arith.constant 24 : index
    %c1_49 = arith.constant 1 : index
    %39 = vector.load %arg9[%c24_48, %c1_49] : memref<36x64xf32, #tpu.memory_space<vmem>>, vector<4x63xf32>
    tpu.vector_store %arg9[%c24_48, %c1_49], %36 {strides = array<i32>} : memref<36x64xf32, #tpu.memory_space<vmem>>, vector<4x63xf32>,
    %c0_50 = arith.constant 0 : index
    %c2_51 = arith.constant 2 : index
    %c0_52 = arith.constant 0 : index
    %c0_53 = arith.constant 0 : index
    %40 = vector.load %arg1[%c0_50, %c2_51, %c0_52, %c0_53] : memref<1x4x4x64xf32, #tpu.memory_space<vmem>>, vector<1x1x4x64xf32>
    %41 = vector.shape_cast %40 : vector<1x1x4x64xf32> to vector<4x64xf32>
    %c28 = arith.constant 28 : index
    %c0_54 = arith.constant 0 : index
    %42 = vector.load %arg9[%c28, %c0_54] : memref<36x64xf32, #tpu.memory_space<vmem>>, vector<4x64xf32>
    tpu.vector_store %arg9[%c28, %c0_54], %41 {strides = array<i32>} : memref<36x64xf32, #tpu.memory_space<vmem>>, vector<4x64xf32>,
    %c0_55 = arith.constant 0 : index
    %c3_56 = arith.constant 3 : index
    %c0_57 = arith.constant 0 : index
    %c0_58 = arith.constant 0 : index
    %43 = vector.load %arg1[%c0_55, %c3_56, %c0_57, %c0_58] : memref<1x4x4x64xf32, #tpu.memory_space<vmem>>, vector<1x1x4x64xf32>
    %44 = vector.shape_cast %43 : vector<1x1x4x64xf32> to vector<4x64xf32>
    %c32 = arith.constant 32 : index
    %c0_59 = arith.constant 0 : index
    %45 = vector.load %arg9[%c32, %c0_59] : memref<36x64xf32, #tpu.memory_space<vmem>>, vector<4x64xf32>
    tpu.vector_store %arg9[%c32, %c0_59], %44 {strides = array<i32>} : memref<36x64xf32, #tpu.memory_space<vmem>>, vector<4x64xf32>,
    %c0_60 = arith.constant 0 : index
    %c0_61 = arith.constant 0 : index
    %46 = vector.load %arg4[%c0_60, %c0_61] : memref<8x36xf32, #tpu.memory_space<vmem>>, vector<8x36xf32>
    %c0_62 = arith.constant 0 : index
    %c0_63 = arith.constant 0 : index
    %47 = vector.load %arg9[%c0_62, %c0_63] : memref<36x64xf32, #tpu.memory_space<vmem>>, vector<36x64xf32>
    %cst_64 = arith.constant dense<0.000000e+00> : vector<8x64xf32>
    %48 = tpu.matmul %46, %47, %cst_64 {dimension_numbers = #tpu.dot_dimension_numbers<[1], [0], [0], [1], [0, 0, 1, 1], [], []>} : vector<8x36xf32>, vector<36x64xf32>, vector<8x64xf32> -> vector<8x64xf32>
    %c0_65 = arith.constant 0 : index
    %c0_66 = arith.constant 0 : index
    %49 = vector.load %arg5[%c0_65, %c0_66] : memref<8x1xf32, #tpu.memory_space<vmem>>, vector<8x1xf32>
    %50 = vector.broadcast %49 : vector<8x1xf32> to vector<8x64xf32>
    %51 = arith.addf %48, %50 : vector<8x64xf32>
    %cst_67 = arith.constant 0.000000e+00 : f32
    %52 = vector.broadcast %cst_67 : f32 to vector<8x64xf32>
    %53 = arith.maximumf %51, %52 : vector<8x64xf32>
    %c0_68 = arith.constant 0 : index
    %c0_69 = arith.constant 0 : index
    %54 = vector.load %arg11[%c0_68, %c0_69] : memref<8x64xf32, #tpu.memory_space<vmem>>, vector<8x64xf32>
    tpu.vector_store %arg11[%c0_68, %c0_69], %53 {strides = array<i32>} : memref<8x64xf32, #tpu.memory_space<vmem>>, vector<8x64xf32>,
    %c0_70 = arith.constant 0 : index
    %c0_71 = arith.constant 0 : index
    %55 = vector.load %arg11[%c0_70, %c0_71] : memref<8x64xf32, #tpu.memory_space<vmem>>, vector<8x55xf32>
    %c0_72 = arith.constant 0 : index
    %c9_73 = arith.constant 9 : index
    %56 = vector.load %arg3[%c0_72, %c9_73] : memref<9x64xf32, #tpu.memory_space<vmem>>, vector<1x55xf32>
    %57 = vector.broadcast %56 : vector<1x55xf32> to vector<8x55xf32>
    %58 = arith.mulf %55, %57 : vector<8x55xf32>
    %cst_74 = arith.constant 0.000000e+00 : f32
    %59 = vector.broadcast %cst_74 : f32 to vector<8x9xf32>
    %c0_75 = arith.constant 0 : index
    %c0_76 = arith.constant 0 : index
    %60 = vector.load %arg10[%c0_75, %c0_76] : memref<76x64xf32, #tpu.memory_space<vmem>>, vector<8x9xf32>
    tpu.vector_store %arg10[%c0_75, %c0_76], %59 {strides = array<i32>} : memref<76x64xf32, #tpu.memory_space<vmem>>, vector<8x9xf32>,
    %c0_77 = arith.constant 0 : index
    %c9_78 = arith.constant 9 : index
    %61 = vector.load %arg10[%c0_77, %c9_78] : memref<76x64xf32, #tpu.memory_space<vmem>>, vector<8x55xf32>
    tpu.vector_store %arg10[%c0_77, %c9_78], %58 {strides = array<i32>} : memref<76x64xf32, #tpu.memory_space<vmem>>, vector<8x55xf32>,
    %c0_79 = arith.constant 0 : index
    %c0_80 = arith.constant 0 : index
    %62 = vector.load %arg11[%c0_79, %c0_80] : memref<8x64xf32, #tpu.memory_space<vmem>>, vector<8x56xf32>
    %cst_81 = arith.constant 0.000000e+00 : f32
    %63 = vector.broadcast %cst_81 : f32 to vector<8x8xf32>
    %c8_82 = arith.constant 8 : index
    %c0_83 = arith.constant 0 : index
    %64 = vector.load %arg10[%c8_82, %c0_83] : memref<76x64xf32, #tpu.memory_space<vmem>>, vector<8x8xf32>
    tpu.vector_store %arg10[%c8_82, %c0_83], %63 {strides = array<i32>} : memref<76x64xf32, #tpu.memory_space<vmem>>, vector<8x8xf32>,
    %c8_84 = arith.constant 8 : index
    %c8_85 = arith.constant 8 : index
    %65 = vector.load %arg10[%c8_84, %c8_85] : memref<76x64xf32, #tpu.memory_space<vmem>>, vector<8x56xf32>
    tpu.vector_store %arg10[%c8_84, %c8_85], %62 {strides = array<i32>} : memref<76x64xf32, #tpu.memory_space<vmem>>, vector<8x56xf32>,
    %c0_86 = arith.constant 0 : index
    %c0_87 = arith.constant 0 : index
    %66 = vector.load %arg11[%c0_86, %c0_87] : memref<8x64xf32, #tpu.memory_space<vmem>>, vector<8x57xf32>
    %c2_88 = arith.constant 2 : index
    %c7 = arith.constant 7 : index
    %67 = vector.load %arg3[%c2_88, %c7] : memref<9x64xf32, #tpu.memory_space<vmem>>, vector<1x57xf32>
    %68 = vector.broadcast %67 : vector<1x57xf32> to vector<8x57xf32>
    %69 = arith.mulf %66, %68 : vector<8x57xf32>
    %cst_89 = arith.constant 0.000000e+00 : f32
    %70 = vector.broadcast %cst_89 : f32 to vector<8x7xf32>
    %c16_90 = arith.constant 16 : index
    %c0_91 = arith.constant 0 : index
    %71 = vector.load %arg10[%c16_90, %c0_91] : memref<76x64xf32, #tpu.memory_space<vmem>>, vector<8x7xf32>
    tpu.vector_store %arg10[%c16_90, %c0_91], %70 {strides = array<i32>} : memref<76x64xf32, #tpu.memory_space<vmem>>, vector<8x7xf32>,
    %c16_92 = arith.constant 16 : index
    %c7_93 = arith.constant 7 : index
    %72 = vector.load %arg10[%c16_92, %c7_93] : memref<76x64xf32, #tpu.memory_space<vmem>>, vector<8x57xf32>
    tpu.vector_store %arg10[%c16_92, %c7_93], %69 {strides = array<i32>} : memref<76x64xf32, #tpu.memory_space<vmem>>, vector<8x57xf32>,
    %c0_94 = arith.constant 0 : index
    %c0_95 = arith.constant 0 : index
    %73 = vector.load %arg11[%c0_94, %c0_95] : memref<8x64xf32, #tpu.memory_space<vmem>>, vector<8x63xf32>
    %c3_96 = arith.constant 3 : index
    %c1_97 = arith.constant 1 : index
    %74 = vector.load %arg3[%c3_96, %c1_97] : memref<9x64xf32, #tpu.memory_space<vmem>>, vector<1x63xf32>
    %75 = vector.broadcast %74 : vector<1x63xf32> to vector<8x63xf32>
    %76 = arith.mulf %73, %75 : vector<8x63xf32>
    %cst_98 = arith.constant 0.000000e+00 : f32
    %77 = vector.broadcast %cst_98 : f32 to vector<8x1xf32>
    %c24_99 = arith.constant 24 : index
    %c0_100 = arith.constant 0 : index
    %78 = vector.load %arg10[%c24_99, %c0_100] : memref<76x64xf32, #tpu.memory_space<vmem>>, vector<8x1xf32>
    tpu.vector_store %arg10[%c24_99, %c0_100], %77 {strides = array<i32>} : memref<76x64xf32, #tpu.memory_space<vmem>>, vector<8x1xf32>,
    %c24_101 = arith.constant 24 : index
    %c1_102 = arith.constant 1 : index
    %79 = vector.load %arg10[%c24_101, %c1_102] : memref<76x64xf32, #tpu.memory_space<vmem>>, vector<8x63xf32>
    tpu.vector_store %arg10[%c24_101, %c1_102], %76 {strides = array<i32>} : memref<76x64xf32, #tpu.memory_space<vmem>>, vector<8x63xf32>,
    %c0_103 = arith.constant 0 : index
    %c0_104 = arith.constant 0 : index
    %80 = vector.load %arg11[%c0_103, %c0_104] : memref<8x64xf32, #tpu.memory_space<vmem>>, vector<8x64xf32>
    %c32_105 = arith.constant 32 : index
    %c0_106 = arith.constant 0 : index
    %81 = vector.load %arg10[%c32_105, %c0_106] : memref<76x64xf32, #tpu.memory_space<vmem>>, vector<8x64xf32>
    tpu.vector_store %arg10[%c32_105, %c0_106], %80 {strides = array<i32>} : memref<76x64xf32, #tpu.memory_space<vmem>>, vector<8x64xf32>,
    %c0_107 = arith.constant 0 : index
    %c1_108 = arith.constant 1 : index
    %82 = vector.load %arg11[%c0_107, %c1_108] : memref<8x64xf32, #tpu.memory_space<vmem>>, vector<8x63xf32>
    %c5 = arith.constant 5 : index
    %c0_109 = arith.constant 0 : index
    %83 = vector.load %arg3[%c5, %c0_109] : memref<9x64xf32, #tpu.memory_space<vmem>>, vector<1x63xf32>
    %84 = vector.broadcast %83 : vector<1x63xf32> to vector<8x63xf32>
    %85 = arith.mulf %82, %84 : vector<8x63xf32>
    %c40 = arith.constant 40 : index
    %c0_110 = arith.constant 0 : index
    %86 = vector.load %arg10[%c40, %c0_110] : memref<76x64xf32, #tpu.memory_space<vmem>>, vector<8x63xf32>
    tpu.vector_store %arg10[%c40, %c0_110], %85 {strides = array<i32>} : memref<76x64xf32, #tpu.memory_space<vmem>>, vector<8x63xf32>,
    %cst_111 = arith.constant 0.000000e+00 : f32
    %87 = vector.broadcast %cst_111 : f32 to vector<8x1xf32>
    %c40_112 = arith.constant 40 : index
    %c63 = arith.constant 63 : index
    %88 = vector.load %arg10[%c40_112, %c63] : memref<76x64xf32, #tpu.memory_space<vmem>>, vector<8x1xf32>
    tpu.vector_store %arg10[%c40_112, %c63], %87 {strides = array<i32>} : memref<76x64xf32, #tpu.memory_space<vmem>>, vector<8x1xf32>,
    %c0_113 = arith.constant 0 : index
    %c7_114 = arith.constant 7 : index
    %89 = vector.load %arg11[%c0_113, %c7_114] : memref<8x64xf32, #tpu.memory_space<vmem>>, vector<8x57xf32>
    %c6_115 = arith.constant 6 : index
    %c0_116 = arith.constant 0 : index
    %90 = vector.load %arg3[%c6_115, %c0_116] : memref<9x64xf32, #tpu.memory_space<vmem>>, vector<1x57xf32>
    %91 = vector.broadcast %90 : vector<1x57xf32> to vector<8x57xf32>
    %92 = arith.mulf %89, %91 : vector<8x57xf32>
    %c48 = arith.constant 48 : index
    %c0_117 = arith.constant 0 : index
    %93 = vector.load %arg10[%c48, %c0_117] : memref<76x64xf32, #tpu.memory_space<vmem>>, vector<8x57xf32>
    tpu.vector_store %arg10[%c48, %c0_117], %92 {strides = array<i32>} : memref<76x64xf32, #tpu.memory_space<vmem>>, vector<8x57xf32>,
    %cst_118 = arith.constant 0.000000e+00 : f32
    %94 = vector.broadcast %cst_118 : f32 to vector<8x7xf32>
    %c48_119 = arith.constant 48 : index
    %c57 = arith.constant 57 : index
    %95 = vector.load %arg10[%c48_119, %c57] : memref<76x64xf32, #tpu.memory_space<vmem>>, vector<8x7xf32>
    tpu.vector_store %arg10[%c48_119, %c57], %94 {strides = array<i32>} : memref<76x64xf32, #tpu.memory_space<vmem>>, vector<8x7xf32>,
    %c0_120 = arith.constant 0 : index
    %c8_121 = arith.constant 8 : index
    %96 = vector.load %arg11[%c0_120, %c8_121] : memref<8x64xf32, #tpu.memory_space<vmem>>, vector<8x56xf32>
    %c56 = arith.constant 56 : index
    %c0_122 = arith.constant 0 : index
    %97 = vector.load %arg10[%c56, %c0_122] : memref<76x64xf32, #tpu.memory_space<vmem>>, vector<8x56xf32>
    tpu.vector_store %arg10[%c56, %c0_122], %96 {strides = array<i32>} : memref<76x64xf32, #tpu.memory_space<vmem>>, vector<8x56xf32>,
    %cst_123 = arith.constant 0.000000e+00 : f32
    %98 = vector.broadcast %cst_123 : f32 to vector<8x8xf32>
    %c56_124 = arith.constant 56 : index
    %c56_125 = arith.constant 56 : index
    %99 = vector.load %arg10[%c56_124, %c56_125] : memref<76x64xf32, #tpu.memory_space<vmem>>, vector<8x8xf32>
    tpu.vector_store %arg10[%c56_124, %c56_125], %98 {strides = array<i32>} : memref<76x64xf32, #tpu.memory_space<vmem>>, vector<8x8xf32>,
    %c0_126 = arith.constant 0 : index
    %c9_127 = arith.constant 9 : index
    %100 = vector.load %arg11[%c0_126, %c9_127] : memref<8x64xf32, #tpu.memory_space<vmem>>, vector<8x55xf32>
    %c8_128 = arith.constant 8 : index
    %c0_129 = arith.constant 0 : index
    %101 = vector.load %arg3[%c8_128, %c0_129] : memref<9x64xf32, #tpu.memory_space<vmem>>, vector<1x55xf32>
    %102 = vector.broadcast %101 : vector<1x55xf32> to vector<8x55xf32>
    %103 = arith.mulf %100, %102 : vector<8x55xf32>
    %c64 = arith.constant 64 : index
    %c0_130 = arith.constant 0 : index
    %104 = vector.load %arg10[%c64, %c0_130] : memref<76x64xf32, #tpu.memory_space<vmem>>, vector<8x55xf32>
    tpu.vector_store %arg10[%c64, %c0_130], %103 {strides = array<i32>} : memref<76x64xf32, #tpu.memory_space<vmem>>, vector<8x55xf32>,
    %cst_131 = arith.constant 0.000000e+00 : f32
    %105 = vector.broadcast %cst_131 : f32 to vector<8x9xf32>
    %c64_132 = arith.constant 64 : index
    %c55 = arith.constant 55 : index
    %106 = vector.load %arg10[%c64_132, %c55] : memref<76x64xf32, #tpu.memory_space<vmem>>, vector<8x9xf32>
    tpu.vector_store %arg10[%c64_132, %c55], %105 {strides = array<i32>} : memref<76x64xf32, #tpu.memory_space<vmem>>, vector<8x9xf32>,
    %c0_133 = arith.constant 0 : index
    %c0_134 = arith.constant 0 : index
    %c0_135 = arith.constant 0 : index
    %c0_136 = arith.constant 0 : index
    %107 = vector.load %arg1[%c0_133, %c0_134, %c0_135, %c0_136] : memref<1x4x4x64xf32, #tpu.memory_space<vmem>>, vector<1x1x4x64xf32>
    %108 = vector.shape_cast %107 : vector<1x1x4x64xf32> to vector<4x64xf32>
    %c72 = arith.constant 72 : index
    %c0_137 = arith.constant 0 : index
    %109 = vector.load %arg10[%c72, %c0_137] : memref<76x64xf32, #tpu.memory_space<vmem>>, vector<4x64xf32>
    tpu.vector_store %arg10[%c72, %c0_137], %108 {strides = array<i32>} : memref<76x64xf32, #tpu.memory_space<vmem>>, vector<4x64xf32>,
    %c0_138 = arith.constant 0 : index
    %c0_139 = arith.constant 0 : index
    %110 = vector.load %arg6[%c0_138, %c0_139] : memref<8x76xf32, #tpu.memory_space<vmem>>, vector<8x76xf32>
    %c0_140 = arith.constant 0 : index
    %c0_141 = arith.constant 0 : index
    %111 = vector.load %arg10[%c0_140, %c0_141] : memref<76x64xf32, #tpu.memory_space<vmem>>, vector<76x64xf32>
    %cst_142 = arith.constant dense<0.000000e+00> : vector<8x64xf32>
    %112 = tpu.matmul %110, %111, %cst_142 {dimension_numbers = #tpu.dot_dimension_numbers<[1], [0], [0], [1], [0, 0, 1, 1], [], []>} : vector<8x76xf32>, vector<76x64xf32>, vector<8x64xf32> -> vector<8x64xf32>
    %c0_143 = arith.constant 0 : index
    %c0_144 = arith.constant 0 : index
    %113 = vector.load %arg7[%c0_143, %c0_144] : memref<8x1xf32, #tpu.memory_space<vmem>>, vector<8x1xf32>
    %114 = vector.broadcast %113 : vector<8x1xf32> to vector<8x64xf32>
    %115 = arith.addf %112, %114 : vector<8x64xf32>
    %cst_145 = arith.constant 0.000000e+00 : f32
    %116 = vector.broadcast %cst_145 : f32 to vector<8x64xf32>
    %117 = arith.maximumf %115, %116 : vector<8x64xf32>
    %c0_146 = arith.constant 0 : index
    %c0_147 = arith.constant 0 : index
    %c0_148 = arith.constant 0 : index
    %118 = vector.load %arg8[%c0_146, %c0_147, %c0_148] : memref<1x8x64xf32, #tpu.memory_space<vmem>>, vector<1x8x64xf32>
    %119 = vector.shape_cast %118 : vector<1x8x64xf32> to vector<8x64xf32>
    %120 = vector.shape_cast %117 : vector<8x64xf32> to vector<1x8x64xf32>
    tpu.vector_store %arg8[%c0_146, %c0_147, %c0_148], %120 {strides = array<i32>} : memref<1x8x64xf32, #tpu.memory_space<vmem>>, vector<1x8x64xf32>,
    return
  }
  func.func @transform_0(%arg0: i32) -> (i32, i32, i32, i32) {
    %c0_i32 = arith.constant 0 : i32
    %c0_i32_0 = arith.constant 0 : i32
    %c0_i32_1 = arith.constant 0 : i32
    %c0_i32_2 = arith.constant 0 : i32
    return %arg0, %c0_i32, %c0_i32_0, %c0_i32_1 : i32, i32, i32, i32
  }
  func.func @transform_1(%arg0: i32) -> (i32, i32) {
    %c0_i32 = arith.constant 0 : i32
    %c0_i32_0 = arith.constant 0 : i32
    %c0_i32_1 = arith.constant 0 : i32
    return %c0_i32, %c0_i32_0 : i32, i32
  }
  func.func @transform_2(%arg0: i32) -> (i32, i32) {
    %c0_i32 = arith.constant 0 : i32
    %c0_i32_0 = arith.constant 0 : i32
    %c0_i32_1 = arith.constant 0 : i32
    return %c0_i32, %c0_i32_0 : i32, i32
  }
  func.func @transform_3(%arg0: i32) -> (i32, i32) {
    %c0_i32 = arith.constant 0 : i32
    %c0_i32_0 = arith.constant 0 : i32
    %c0_i32_1 = arith.constant 0 : i32
    return %c0_i32, %c0_i32_0 : i32, i32
  }
  func.func @transform_4(%arg0: i32) -> (i32, i32) {
    %c0_i32 = arith.constant 0 : i32
    %c0_i32_0 = arith.constant 0 : i32
    %c0_i32_1 = arith.constant 0 : i32
    return %c0_i32, %c0_i32_0 : i32, i32
  }
  func.func @transform_5(%arg0: i32) -> (i32, i32) {
    %c0_i32 = arith.constant 0 : i32
    %c0_i32_0 = arith.constant 0 : i32
    %c0_i32_1 = arith.constant 0 : i32
    return %c0_i32, %c0_i32_0 : i32, i32
  }
  func.func @transform_6(%arg0: i32) -> (i32, i32) {
    %c0_i32 = arith.constant 0 : i32
    %c0_i32_0 = arith.constant 0 : i32
    %c0_i32_1 = arith.constant 0 : i32
    return %c0_i32, %c0_i32_0 : i32, i32
  }
  func.func @transform_7(%arg0: i32) -> (i32, i32, i32) {
    %c0_i32 = arith.constant 0 : i32
    %c0_i32_0 = arith.constant 0 : i32
    %c0_i32_1 = arith.constant 0 : i32
    return %arg0, %c0_i32, %c0_i32_0 : i32, i32, i32
  }
}

</mosaic_0001>

<bundles_post_ra>
// kernel: basic_block_forward.1
= control target key start
LH: loop header
LB: loop body
LE: loop exit
PB: predicated region body
PF: predicated region fallthrough
CT: control target
= control target key end

     0   :  { %s928_s24 = smov 0   ;;  %s1054_s0 = inlined_call_operand.vmem [shape: f32[2,4,4,64], index: 0, kind: input, shape index: {}]   ;;  %s1055_s1 = inlined_call_operand.vmem [shape: f32[9,64], index: 1, kind: input, shape index: {}]   ;;  %s1056_s2 = inlined_call_operand.vmem [shape: f32[9,64], index: 2, kind: input, shape index: {}]   ;;  %s1057_s3 = inlined_call_operand.vmem [shape: f32[8,36], index: 3, kind: input, shape index: {}]   ;;  %s1058_s4 = inlined_call_operand.vmem [shape: f32[8,1], index: 4, kind: input, shape index: {}]   ;;  %s1059_s5 = inlined_call_operand.vmem [shape: f32[8,76], index: 5, kind: input, shape index: {}]   ;;  %s1060_s6 = inlined_call_operand.vmem [shape: f32[8,1], index: 6, kind: input, shape index: {}]   ;;  %s1061_s7 = inlined_call_operand.vmem [shape: f32[2,8,64], index: 7, kind: output, shape index: {}]  }
   0x1 LB: > { %s738_s25 = sadd.s32 4294967295, %s873_s24   ;;  %p742_p0 = scmp.ge.s32.totalorder %s873_s24, 1  ;;  %s873_s24 = sphi %s928_s24, %s17_s24  }
   0x2   : > { %p237_p1 = scmp.lt.s32.totalorder %s873_s24, 3 }
   0x4   : > { %p238_p2 = pnand %p742_p0, %p237_p1 }
   0x5   : > { %v747_v0 = vld [vmem:[%s1055_s1] ss:$0 sm:$0xff] (!%p238_p2)  ;;  %s875_s28 = smov (!%p238_p2), 119   ;;  %v754_v1 = vld [vmem:[%s1055_s1 + $0x6] ss:$0 sm:$0xff] (!%p238_p2)  ;;  %p268_p3 = scmp.lt.s32.totalorder (!%p238_p2), %s738_s25, 1 }
   0x6   : > { %241 = sbr.rel (%p238_p2) target bundleno = 849 (0x351), region = 48  ;;  %285 = vrot.lane.b32.xlu0 (!%p238_p2), %v747_v0, %s875_s28  ;;  %vm299_vm0 = vcmask (!%p238_p2), 60416   ;;  %v751_v2 = vld [vmem:[%s1055_s1 + $0x3] ss:$0 sm:$0xff] (!%p238_p2)  ;;  %s876_s10 = smov (!%p238_p2), 127   ;;  %v877_v3 = vmov (!%p238_p2), 0.0  }
   0x7   : > { %346 = vrot.lane.b32.xlu1 (!%p238_p2), %v754_v1, %s876_s10  ;;  %308 = vst.msk [vmem:[#allocation2 + $0x8] sm:$0xf] (!%p238_p2), %vm299_vm0, %v877_v3  ;;  %300 = vst.msk [vmem:[#allocation2 + $0x4] sm:$0xf] (!%p238_p2), %vm299_vm0, %v877_v3  ;;  %vm289_vm1 = vcmask (!%p238_p2), 68608   ;;  %s878_s15 = smov (!%p238_p2), 8  }
   0x8   : > { %290 = vst.msk [vmem:[#allocation2] sm:$0xf] (!%p238_p2), %vm289_vm1, %v877_v3  ;;  %vm326_vm2 = vcmask (!%p238_p2), 3072   ;;  %v879_v6 = vmov (!%p238_p2), 0.0|0.0   ;;  %vm335_vm3 = vcmask (!%p238_p2), 519168   ;;  %s880_s16 = smov (!%p238_p2), 9  }
   0x9   : > { %327 = vst.msk [vmem:[#allocation2 + $0xc] sm:$0xf] (!%p238_p2), %vm326_vm2, %v877_v3  ;;  %350 = vst.msk [vmem:[#allocation2 + $0x18] sm:$0xf] (!%p238_p2), %vm326_vm2, %v877_v3  ;;  %823 = vmatprep.subr.bf16.mxu0 (!%p238_p2), %v879_v6  ;;  %829 = vmatprep.subr.bf16.mxu1 (!%p238_p2), %v879_v6  ;;  %vm305_vm4 = vcmask (!%p238_p2), 519232   ;;  %s881_s17 = smov (!%p238_p2), 1  }
   0xa   : > { %322 = vrot.lane.b32.xlu0 (!%p238_p2), %v751_v2, %s876_s10  ;;  %vm882_vm5 = vmmov (!%p238_p2), 0   ;;  %v366_v22 = vld [vmem:[%s1058_s4] sm:$0xff] (!%p238_p2)  ;;  %v883_v24 = vmov (!%p238_p2), 0   ;;  %s884_s29 = smov (!%p238_p2), 121   ;;  %s885_s12 = smov (!%p238_p2), 7   ;;  %vm295_vm6 = vcmask (!%p238_p2), 519240  }
   0xb   : > { %797 = vmatprep.mubr.msk.f32.mxu0 (!%p238_p2), %vm882_vm5, %v877_v3  ;;  %820 = vmatprep.mubr.msk.f32.mxu1 (!%p238_p2), %vm882_vm5, %v877_v3  ;;  %v759_v23 = vld [vmem:[%s1056_s2] ss:$0 sm:$0xff] (!%p238_p2)  ;;  %v760_v25 = vld [vmem:[%s1056_s2 + $0x2] ss:$0 sm:$0xff] (!%p238_p2)  ;;  %v761_v26 = vld [vmem:[%s1056_s2 + $0x3] ss:$0 sm:$0xff] (!%p238_p2) }
   0xc   : > { %866 = vset.pattern.permute.xlu0 (!%p238_p2), %v883_v24  ;;  %v762_v27 = vld [vmem:[%s1056_s2 + $0x5] ss:$0 sm:$0xff] (!%p238_p2)  ;;  %v763_v28 = vld [vmem:[%s1056_s2 + $0x6] ss:$0 sm:$0xff] (!%p238_p2)  ;;  %v764_v29 = vld [vmem:[%s1056_s2 + $0x8] ss:$0 sm:$0xff] (!%p238_p2) }
   0xd   : > { %s1063_s25 = smov (!%p268_p3, %s738_s25), 1  ;;  %vm332_vm7 = vcmask 519176   ;;  %vm376_vm8 = vcmask 1043456   ;;  %v360_v40 = vld [vmem:[%s1057_s3] sm:$0xff]  ;;  %vm372_vm9 = vcmask 293888   ;;  %vm473_vm10 = vcmask 64512  }
   0xe   : > { %s769_s11 = sshll.u32 %s1063_s25, 4  ;;  %474 = vst.msk [vmem:[#allocation3 + $0x8] sm:$0xff] %vm473_vm10, %v877_v3  ;;  %vm464_vm11 = vcmask 72704   ;;  %vm451_vm12 = vcmask 523264   ;;  %vm511_vm13 = vcmask 7168   ;;  %vm492_vm14 = vcmask 56320  }
   0xf   : > { %s957_s14 = scalar_lea.vmem %s1054_s0, %s769_s11  ;;  %465 = vst.msk [vmem:[#allocation3] sm:$0xff] %vm464_vm11, %v877_v3  ;;  %v600_v60 = vld [vmem:[%s1060_s6] sm:$0xff]  ;;  %vm479_vm15 = vcmask 523328   ;;  %vm470_vm0 = vcmask 523336   ;;  %vm517_vm1 = vcmask 523272   ;;  %vm498_vm2 = vcmask 523320  }
  0x10   : > { %v749_v4 = vld [vmem:[%s957_s14 + $0xc] sm:$0xf]  ;;  %v748_v5 = vld [vmem:[%s957_s14 + $0x8] sm:$0xf]  ;;  %v334_v7 = vld [vmem:[%s957_s14] sm:$0xf] }
  0x11   : > { %310 = vrot.lane.b32.xlu1 %v749_v4, %s878_s15  ;;  %302 = vrot.lane.b32.xlu0 %v748_v5, %s878_s15  ;;  %v752_v8 = vld [vmem:[%s957_s14 + $0x4] sm:$0xf]  ;;  %v746_v9 = vld [vmem:[%s957_s14 + $0xc] sm:$0xf]  ;;  %336 = vst.msk [vmem:[#allocation2 + $0x10] sm:$0xf] %vm335_vm3, %v334_v7 }
  0x12   : > { %338 = vst.msk [vmem:[#allocation2 + $0x14] sm:$0xf] %vm335_vm3, %v752_v8  ;;  %v755_v10 = vld [vmem:[%s957_s14 + $0x8] sm:$0xf]  ;;  %v753_v12 = vld [vmem:[%s957_s14 + $0xc] sm:$0xf] }
  0x13   : > { %357 = vst.msk [vmem:[#allocation2 + $0x1c] sm:$0xf] %vm335_vm3, %v755_v10  ;;  %v750_v15 = vld [vmem:[%s957_s14 + $0x4] sm:$0xf]  ;;  %v756_v17 = vld [vmem:[%s957_s14 + $0xc] sm:$0xf] }
  0x14   : > { %359 = vst.msk [vmem:[#allocation2 + $0x20] sm:$0xf] %vm335_vm3, %v756_v17  ;;  %v587_v56 = vld [vmem:[%s957_s14] sm:$0xf]  ;;  %vm536_vm5 = vcmask 515072   ;;  %vm564_vm10 = vcmask 457728  }
  0x15   : > { %512 = vst.msk [vmem:[#allocation3 + $0x18] sm:$0xff] %vm511_vm13, %v877_v3  ;;  %vm566_vm11 = vcmask 523712   ;;  %vm887_vm13 = vmmov 1   ;;  %s745_s14 = sshll.u32 %s1063_s25, 3 }
  0x16   : > { %493 = vst.msk [vmem:[#allocation3 + $0x10] sm:$0xff] %vm492_vm14, %v877_v3  ;;  %vm843_vm14 = vmpackc.low %vm376_vm8, %vm887_vm13  ;;  %s276_s23 = scalar_lea.vmem %s1061_s7, %s745_s14 }
  0x17   : > { %588 = vst.msk [vmem:[#allocation3 + $0x48] sm:$0xf] %vm335_vm3, %v587_v56  ;;  %vm555_vm3 = vcmask 465920  }
  0x19   : > { %v363_v33 = vld [vmem:[#allocation2 + $0x10] sm:$0xff] }
  0x1b   : > { %v365_v39 = vld [vmem:[#allocation2 + $0x20] sm:$0xf] }
  0x78   : > { %v286_v11 = vpop.permute.xlu0 %285 }
  0x79   : > { %v288_v13 = vmul.f32 %v746_v9, %v286_v11  ;;  %v347_v14 = vpop.permute.xlu1 %346 }
  0x7a   : > { %v349_v16 = vmul.f32 %v753_v12, %v347_v14 }
  0x7b   : > { %292 = vrot.lane.b32.xlu1 %v288_v13, %s880_s16 }
  0x7c   : > { %v323_v18 = vpop.permute.xlu0 %322 }
  0x7d   : > { %v325_v19 = vmul.f32 %v750_v15, %v323_v18 }
  0x7f   : > { %329 = vrot.lane.b32.xlu0 %v325_v19, %s881_s17  ;;  %352 = vrot.lane.b32.xlu1 %v349_v16, %s881_s17  ;;  %v599_v19 = vld [vmem:[#allocation3 + $0x48] sm:$0xf] }
  0x83   : > { %v311_v20 = vpop.permute.xlu1 %310  ;;  %v303_v21 = vpop.permute.xlu0 %302  ;;  %460 = vrot.lane.b32.xlu1 %v759_v23, %s875_s28  ;;  %369 = vperm.xlu0 %866, %v366_v22  }
  0x84   : > { %313 = vst.msk [vmem:[#allocation2 + $0x8] sm:$0xf] %vm305_vm4, %v311_v20  ;;  %306 = vst.msk [vmem:[#allocation2 + $0x4] sm:$0xf] %vm305_vm4, %v303_v21  ;;  %vm557_vm4 = vcmask 523720  }
  0x87   : > { %488 = vrot.lane.b32.xlu1 %v760_v25, %s884_s29  ;;  %507 = vrot.lane.b32.xlu0 %v761_v26, %s876_s10 }
  0x8b   : > { %528 = vrot.lane.b32.xlu1 %v762_v27, %s881_s17  ;;  %547 = vrot.lane.b32.xlu0 %v763_v28, %s885_s12 }
  0x8f   : > { %575 = vrot.lane.b32.xlu1 %v764_v29, %s880_s16 }
  0xed   : > { %v293_v30 = vpop.permute.xlu1 %292 }
  0xee   : > { %296 = vst.msk [vmem:[#allocation2] sm:$0xf] %vm295_vm6, %v293_v30  ;;  %vm538_vm6 = vcmask 523768  }
  0xf1   : > { %v330_v31 = vpop.permute.xlu0 %329  ;;  %v353_v32 = vpop.permute.xlu1 %352 }
  0xf2   : > { %333 = vst.msk [vmem:[#allocation2 + $0xc] sm:$0xf] %vm332_vm7, %v330_v31  ;;  %355 = vst.msk [vmem:[#allocation2 + $0x18] sm:$0xf] %vm332_vm7, %v353_v32  ;;  %vm583_vm7 = vcmask 449536  }
  0xf5   : > { %v361_v34 = vld [vmem:[#allocation2] sm:$0xff]  ;;  %v461_v45 = vpop.permute.xlu1 %460 }
  0xf9   : > { %v362_v35 = vld [vmem:[#allocation2 + $0x8] sm:$0xff]  ;;  %v364_v36 = vld [vmem:[#allocation2 + $0x18] sm:$0xff]  ;;  %v489_v47 = vpop.permute.xlu1 %488 }
  0xfa   : > { %v824_v37 = vpack.c.bf16 %v362_v35, %v361_v34  ;;  %v827_v38 = vpack.c.bf16 %v364_v36, %v363_v33 }
  0xfc   : > { %825 = vmatpush3.bf16.msra.mxu0 %v824_v37 }
  0xfd   : > { %826 = vmatprep.subr.bf16.mxu0 %v879_v6  ;;  %v529_v51 = vpop.permute.xlu1 %528 }
 0x100   : > { %828 = vmatpush3.bf16.msra.mxu0 %v827_v38 }
 0x101   : > { %795 = vmatprep.subr.mxu0 %v877_v3  ;;  %v576_v57 = vpop.permute.xlu1 %575 }
 0x102   : > { %v370_v41 = vpop.permute.xlu0 %369 }
 0x104   : > { %796 = vmatpush3.msk.msra.mxu0 %vm376_vm8, %v365_v39 }
 0x105   : > { %798 = vmatmul.mubr.msk.f32.vlgmr.msra.gmra.mrb[0].mxu0 %vm372_vm9, %v360_v40  ;;  %vm585_vm9 = vcmask 523704  }
 0x106   : > { %v508_v48 = vpop.permute.xlu0 %507 }
 0x10a   : > { %v548_v53 = vpop.permute.xlu0 %547 }
 0x1d8   : > { %v446_v42 = vpop.f32.mrb[0].mxu0 }
 0x1d9   : > { %v447_v43 = vadd.f32 %v446_v42, %v370_v41  ;;  %v799_v44 = vpop.f32.mrb[1].mxu0 }
 0x1db   : > { %v450_v46 = vmax.f32 %v447_v43, 0.0 }
 0x1dd   : > { %452 = vst.msk [vmem:[#allocation4] sm:$0xff] %vm451_vm12, %v450_v46 }
 0x1e4   : > { %v519_v49 = vld [vmem:[#allocation4] sm:$0xff] }
 0x1e5   : > { %520 = vst.msk [vmem:[#allocation3 + $0x20] sm:$0xff] %vm451_vm12, %v519_v49  ;;  %v463_v50 = vmul.f32 %v519_v49, %v461_v45  ;;  %476 = vrot.lane.b32.xlu1 %v519_v49, %s878_s15  ;;  %v510_v52 = vmul.f32 %v519_v49, %v508_v48  ;;  %v491_v54 = vmul.f32 %v519_v49, %v489_v47  ;;  %s886_s15 = smov 120  }
 0x1e6   : > { %v550_v55 = vmul.f32 %v548_v53, %v519_v49  ;;  %v531_v58 = vmul.f32 %v529_v51, %v519_v49  ;;  %v578_v59 = vmul.f32 %v576_v57, %v519_v49 }
 0x1e7   : > { %467 = vrot.lane.b32.xlu0 %v463_v50, %s880_s16 }
 0x1e9   : > { %514 = vrot.lane.b32.xlu1 %v510_v52, %s881_s17 }
 0x1eb   : > { %495 = vrot.lane.b32.xlu0 %v491_v54, %s885_s12 }
 0x1ec   : > { %v594_v13 = vld [vmem:[#allocation3 + $0x20] sm:$0xff] }
 0x1ed   : > { %552 = vrot.lane.b32.xlu1 %v550_v55, %s884_s29 }
 0x1ef   : > { %533 = vrot.lane.b32.xlu0 %v531_v58, %s876_s10 }
 0x1f1   : > { %580 = vrot.lane.b32.xlu1 %v578_v59, %s875_s28 }
 0x1f3   : > { %561 = vrot.lane.b32.xlu0 %v519_v49, %s886_s15 }
 0x1f7   : > { %603 = vperm.xlu0 %866, %v600_v60  }
 0x257   : > { %v477_v61 = vpop.permute.xlu1 %476 }
 0x258   : > { %480 = vst.msk [vmem:[#allocation3 + $0x8] sm:$0xff] %vm479_vm15, %v477_v61  ;;  %vm606_vm15 = vcmask 621568  }
 0x259   : > { %v468_v62 = vpop.permute.xlu0 %467 }
 0x25a   : > { %471 = vst.msk [vmem:[#allocation3] sm:$0xff] %vm470_vm0, %v468_v62 }
 0x25b   : > { %v515_v63 = vpop.permute.xlu1 %514 }
 0x25c   : > { %518 = vst.msk [vmem:[#allocation3 + $0x18] sm:$0xff] %vm517_vm1, %v515_v63 }
 0x25d   : > { %v496_v0 = vpop.permute.xlu0 %495 }
 0x25e   : > { %499 = vst.msk [vmem:[#allocation3 + $0x10] sm:$0xff] %vm498_vm2, %v496_v0 }
 0x25f   : > { %v553_v1 = vpop.permute.xlu1 %552  ;;  %v591_v5 = vld [vmem:[#allocation3 + $0x8] sm:$0xff] }
 0x260   : > { %556 = vst.msk [vmem:[#allocation3 + $0x30] sm:$0xff] %vm555_vm3, %v553_v1 }
 0x261   : > { %558 = vst.msk [vmem:[#allocation3 + $0x30] sm:$0xff] %vm557_vm4, %v877_v3  ;;  %v534_v2 = vpop.permute.xlu0 %533  ;;  %v590_v4 = vld [vmem:[#allocation3] sm:$0xff] }
 0x262   : > { %537 = vst.msk [vmem:[#allocation3 + $0x28] sm:$0xff] %vm536_vm5, %v534_v2  ;;  %v830_v7 = vpack.c.bf16 %v591_v5, %v590_v4 }
 0x263   : > { %539 = vst.msk [vmem:[#allocation3 + $0x28] sm:$0xff] %vm538_vm6, %v877_v3  ;;  %v581_v8 = vpop.permute.xlu1 %580  ;;  %v593_v11 = vld [vmem:[#allocation3 + $0x18] sm:$0xff] }
 0x264   : > { %584 = vst.msk [vmem:[#allocation3 + $0x40] sm:$0xff] %vm583_vm7, %v581_v8  ;;  %831 = vmatpush3.bf16.msra.mxu1 %v830_v7 }
 0x265   : > { %586 = vst.msk [vmem:[#allocation3 + $0x40] sm:$0xff] %vm585_vm9, %v877_v3  ;;  %v562_v9 = vpop.permute.xlu0 %561  ;;  %832 = vmatprep.subr.bf16.mxu1 %v879_v6  ;;  %v592_v10 = vld [vmem:[#allocation3 + $0x10] sm:$0xff] }
 0x266   : > { %565 = vst.msk [vmem:[#allocation3 + $0x38] sm:$0xff] %vm564_vm10, %v562_v9  ;;  %v833_v12 = vpack.c.bf16 %v593_v11, %v592_v10 }
 0x267   : > { %567 = vst.msk [vmem:[#allocation3 + $0x38] sm:$0xff] %vm566_vm11, %v877_v3  ;;  %v589_v3 = vld [vmem:[%s1059_s5] sm:$0xff] }
 0x268   : > { %834 = vmatpush3.bf16.msra.mxu1 %v833_v12  ;;  %v596_v16 = vld [vmem:[#allocation3 + $0x30] sm:$0xff] }
 0x269   : > { %835 = vmatprep.subr.bf16.mxu1 %v879_v6 }
 0x26a   : > { %v595_v14 = vld [vmem:[#allocation3 + $0x28] sm:$0xff] }
 0x26b   : > { %v836_v15 = vpack.c.bf16 %v595_v14, %v594_v13 }
 0x26c   : > { %v598_v18 = vld [vmem:[#allocation3 + $0x40] sm:$0xff] }
 0x26d   : > { %837 = vmatpush3.bf16.msra.mxu1 %v836_v15  ;;  %v842_v21 = vpack.c.bf16 %v599_v19, %v598_v18 }
 0x26e   : > { %838 = vmatprep.subr.bf16.mxu1 %v879_v6  ;;  %v597_v17 = vld [vmem:[#allocation3 + $0x38] sm:$0xff] }
 0x26f   : > { %v839_v20 = vpack.c.bf16 %v597_v17, %v596_v16 }
 0x271   : > { %840 = vmatpush3.bf16.msra.mxu1 %v839_v20 }
 0x272   : > { %841 = vmatprep.subr.bf16.mxu1 %v879_v6 }
 0x275   : > { %844 = vmatpush3.bf16.msk.msra.mxu1 %vm843_vm14, %v842_v21 }
 0x276   : > { %v604_v22 = vpop.permute.xlu0 %603 }
 0x278   : > { %821 = vmatmul.mubr.msk.f32.vlgmr.msra.gmra.mrb[0].mxu1 %vm606_vm15, %v589_v3 }
 0x34b   : > { %v679_v23 = vpop.f32.mrb[0].mxu1 }
 0x34c   : > { %v680_v24 = vadd.f32 %v679_v23, %v604_v22  ;;  %v822_v25 = vpop.f32.mrb[1].mxu1 }
 0x34e   : > { %v683_v6 = vmax.f32 %v680_v24, 0.0 }
 0x350   : > { %684 = vst.msk [vmem:[%s276_s23] sm:$0xff] %vm451_vm12, %v683_v6 }
 0x351 PF: > { %s17_s24 = sadd.s32 1, %s873_s24  }
 0x352   : > { %p14_p4 = scmp.ge.s32.totalorder %s17_s24, 4  }
 0x354   :  { %16 = sbr.rel (!%p14_p4) target bundleno = 1 (0x1), region = 81 }

</bundles_post_ra>
